<compile_context>
chip_gen: v7x
topology: tpu7x:2x2x1
jax: 0.10.0
libtpu: 0.0.40
codegen_flags: <defaults>
</compile_context>

<pallas_src>
import functools

import jax
import jax.numpy as jnp
from jax.experimental import pallas as pl
from jax.experimental.pallas import tpu as pltpu

_LANE = 128     # lane width (last dim)
_SUBLANE = 8    # sublane width (second-to-last dim, f32)


def _round_up(n, m):
    return ((n + m - 1) // m) * m


def _softplus_beta(x, beta, threshold=20.0):
    """PyTorch Softplus(beta, threshold=20) semantics. `beta` is a Python float,
    so 1/beta is a compile-time constant (multiply, not divide)."""
    inv_beta = 1.0 / beta
    bx = beta * x
    # Clamp exp argument for safety; the where picks the linear branch anyway.
    sp = jnp.log1p(jnp.exp(jnp.minimum(bx, threshold))) * inv_beta
    return jnp.where(bx > threshold, x, sp)


def _ae_kernel(x_ref,
               w1_ref, b1_ref, w2_ref, b2_ref,
               w3_ref, b3_ref, w4_ref, b4_ref,
               rep_ref, out_ref,
               *, betas):
    beta1, beta2, beta3, beta4 = betas
    wdt = w1_ref.dtype  # matmul input dtype (f32 default, bf16 optional)

    x = x_ref[...]

    # encoder
    h1 = jnp.dot(x.astype(wdt), w1_ref[...],
                 preferred_element_type=jnp.float32) + b1_ref[...]
    h1 = _softplus_beta(h1, beta1)
    rep = jnp.dot(h1.astype(wdt), w2_ref[...],
                  preferred_element_type=jnp.float32) + b2_ref[...]
    rep = _softplus_beta(rep, beta2)
    rep_ref[...] = rep.astype(rep_ref.dtype)

    # decoder (uses the non-detached representation, as in the PyTorch module)
    h3 = jnp.dot(rep.astype(wdt), w3_ref[...],
                 preferred_element_type=jnp.float32) + b3_ref[...]
    h3 = _softplus_beta(h3, beta3)
    out = jnp.dot(h3.astype(wdt), w4_ref[...],
                  preferred_element_type=jnp.float32) + b4_ref[...]
    out = _softplus_beta(out, beta4)
    out_ref[...] = out.astype(out_ref.dtype)


def _pad2(a, rows, cols):
    r, c = a.shape
    return jnp.pad(a, ((0, rows - r), (0, cols - c)))


def autoencoder_two_layers(x, params, *, input_size, hidden_size, more_hidden_size,
                           batch_tile=512, matmul_dtype=jnp.float32):
    """Forward pass. Returns (representation, output) like the PyTorch module.

    params: dict with w1..w4 in [in, out] layout and b1..b4 as [1, out].
    """
    B = x.shape[0]
    assert x.shape[1] == input_size

    # ---- padded (lane-dense) feature dims and batch tiling ------------------
    Din = _round_up(input_size, _LANE)
    Dh = _round_up(hidden_size, _LANE)
    Dm = _round_up(more_hidden_size, _LANE)

    TB = _round_up(min(batch_tile, _round_up(B, _SUBLANE)), _SUBLANE)
    Bp = _round_up(B, TB)
    n_tiles = Bp // TB

    f32 = jnp.float32
    xp = jnp.pad(x.astype(f32), ((0, Bp - B), (0, Din - input_size)))
    xp = xp.astype(matmul_dtype)
    # Zero-padded weight rows guarantee padded activation lanes contribute 0.
    w1 = _pad2(params["w1"].astype(f32), Din, Dh).astype(matmul_dtype)
    w2 = _pad2(params["w2"].astype(f32), Dh, Dm).astype(matmul_dtype)
    w3 = _pad2(params["w3"].astype(f32), Dm, Dh).astype(matmul_dtype)
    w4 = _pad2(params["w4"].astype(f32), Dh, Din).astype(matmul_dtype)
    b1 = _pad2(params["b1"].astype(f32), 1, Dh)
    b2 = _pad2(params["b2"].astype(f32), 1, Dm)
    b3 = _pad2(params["b3"].astype(f32), 1, Dh)
    b4 = _pad2(params["b4"].astype(f32), 1, Din)

    kernel = functools.partial(
        _ae_kernel,
        betas=(float(hidden_size),        # soft1 = Softplus(hidden_size)
               float(more_hidden_size),   # soft2 = Softplus(more_hidden_size)
               float(hidden_size),        # soft3 = Softplus(hidden_size)
               float(input_size)),        # soft4 = Softplus(input_size)
    )

    # ---- BlockSpecs ---------------------------------------------------------
    def batch_spec(feat):
        # activation tiles: indexed by the batch grid axis, pipelined/double-buffered
        return pl.BlockSpec((TB, feat), lambda i: (i, 0),
                            memory_space=pltpu.MemorySpace.VMEM)

    def resident_spec(shape):
        # weights/biases: constant index_map -> DMA'd once, VMEM-resident
        return pl.BlockSpec(shape, lambda i: tuple(0 for _ in shape),
                            memory_space=pltpu.MemorySpace.VMEM)

    in_specs = [
        batch_spec(Din),
        resident_spec((Din, Dh)), resident_spec((1, Dh)),
        resident_spec((Dh, Dm)), resident_spec((1, Dm)),
        resident_spec((Dm, Dh)), resident_spec((1, Dh)),
        resident_spec((Dh, Din)), resident_spec((1, Din)),
    ]
    out_specs = (batch_spec(Dm), batch_spec(Din))

    # ---- cost estimate + explicit VMEM budget (v7x has only 64 MiB) ---------
    bpe = jnp.dtype(matmul_dtype).itemsize
    weight_bytes = bpe * (w1.size + w2.size + w3.size + w4.size) + \
        4 * (b1.size + b2.size + b3.size + b4.size)
    act_tile_bytes = bpe * TB * Din + 4 * TB * (Dm + Din)
    vmem_limit = int(min(max(weight_bytes + 2 * act_tile_bytes + (8 << 20),
                             16 << 20), 64 << 20))

    cost = pl.CostEstimate(
        flops=2 * Bp * (Din * Dh + Dh * Dm + Dm * Dh + Dh * Din),
        transcendentals=2 * Bp * (Dh + Dm + Dh + Din),   # exp + log1p per element
        bytes_accessed=int(weight_bytes + bpe * Bp * Din + 4 * Bp * (Dm + Din)),
    )

    rep_p, out_p = pl.pallas_call(
        kernel,
        out_shape=(
            jax.ShapeDtypeStruct((Bp, Dm), jnp.float32),
            jax.ShapeDtypeStruct((Bp, Din), jnp.float32),
        ),
        grid=(n_tiles,),
        in_specs=in_specs,
        out_specs=out_specs,
        compiler_params=pltpu.CompilerParams(
            dimension_semantics=("parallel",),   # megacore sharding on v7x
            vmem_limit_bytes=vmem_limit,
        ),
        cost_estimate=cost,
    )(xp, w1, b1, w2, b2, w3, b3, w4, b4)

    rep = rep_p[:B, :more_hidden_size]
    out = out_p[:B, :input_size]
    # .detach() is a no-op for forward values; use stop_gradient for parity.
    return jax.lax.stop_gradient(rep), out


def init_params(key, input_size, hidden_size, more_hidden_size):
    """Deterministic init mirroring the PyTorch module:
    xavier_normal_ weights, default Linear bias init U(-1/sqrt(fan_in), 1/sqrt(fan_in)).
    Weights are stored pre-transposed as [in, out]; biases as [1, out]."""
    def xavier_normal(k, fan_in, fan_out):
        std = (2.0 / (fan_in + fan_out)) ** 0.5
        # Pytorch weight is [out, in]; sampling i.i.d. normal, transposing is equivalent.
        return std * jax.random.normal(k, (fan_in, fan_out), dtype=jnp.float32)

    def bias(k, fan_in, fan_out):
        bound = 1.0 / (fan_in ** 0.5)
        return jax.random.uniform(k, (1, fan_out), dtype=jnp.float32,
                                  minval=-bound, maxval=bound)

    ks = jax.random.split(key, 8)
    dims = [(input_size, hidden_size),
            (hidden_size, more_hidden_size),
            (more_hidden_size, hidden_size),
            (hidden_size, input_size)]
    params = {}
    for i, (fi, fo) in enumerate(dims, start=1):
        params[f"w{i}"] = xavier_normal(ks[2 * (i - 1)], fi, fo)
        params[f"b{i}"] = bias(ks[2 * (i - 1) + 1], fi, fo)
    return params


if __name__ == "__main__":
    input_size, hidden_size, more_hidden_size = 16, 32, 8
    batch = 8

    key = jax.random.PRNGKey(0)
    k_x, k_p = jax.random.split(key)
    x = jax.random.normal(k_x, (batch, input_size), dtype=jnp.float32)
    params = init_params(k_p, input_size, hidden_size, more_hidden_size)

    fwd = jax.jit(functools.partial(
        autoencoder_two_layers,
        input_size=input_size,
        hidden_size=hidden_size,
        more_hidden_size=more_hidden_size,
    ))
    rep, out = fwd(x, params)
    jax.block_until_ready((rep, out))

    # Quick sanity check against a plain-JAX reference.
    def ref_fwd(x, p):
        def sp(v, beta):
            bv = beta * v
            return jnp.where(bv > 20.0, v,
                             jnp.log1p(jnp.exp(jnp.minimum(bv, 20.0))) / beta)
        h1 = sp(x @ p["w1"] + p["b1"], hidden_size)
        r = sp(h1 @ p["w2"] + p["b2"], more_hidden_size)
        h3 = sp(r @ p["w3"] + p["b3"], hidden_size)
        o = sp(h3 @ p["w4"] + p["b4"], input_size)
        return r, o

    rep_ref, out_ref = ref_fwd(x, params)
    assert rep.shape == (batch, more_hidden_size) and out.shape == (batch, input_size)
    assert jnp.allclose(rep, rep_ref, atol=1e-5, rtol=1e-5)
    assert jnp.allclose(out, out_ref, atol=1e-5, rtol=1e-5)

    print("KERNEL_OK")
</pallas_src>

<mosaic_0001>
module attributes {stable_mosaic.version = 11 : i64} {
  func.func @_ae_kernel(%arg0: i32, %arg1: memref<8x128xf32, #tpu.memory_space<vmem>>, %arg2: memref<128x128xf32, #tpu.memory_space<vmem>>, %arg3: memref<1x128xf32, #tpu.memory_space<vmem>>, %arg4: memref<128x128xf32, #tpu.memory_space<vmem>>, %arg5: memref<1x128xf32, #tpu.memory_space<vmem>>, %arg6: memref<128x128xf32, #tpu.memory_space<vmem>>, %arg7: memref<1x128xf32, #tpu.memory_space<vmem>>, %arg8: memref<128x128xf32, #tpu.memory_space<vmem>>, %arg9: memref<1x128xf32, #tpu.memory_space<vmem>>, %arg10: memref<8x128xf32, #tpu.memory_space<vmem>>, %arg11: memref<8x128xf32, #tpu.memory_space<vmem>>) attributes {dimension_semantics = [#tpu.dimension_semantics<parallel>], iteration_bounds = array<i64: 1>, scalar_prefetch = 0 : i64, scratch_operands = 0 : i64, tpu.core_type = #tpu.core_type<tc>, window_params = [{transform_indices = @transform_0, window_bounds = array<i64: 8, 128>}, {pipeline_mode = #tpu.pipeline_mode<synchronous>, transform_indices = @transform_1, window_bounds = array<i64: 128, 128>}, {pipeline_mode = #tpu.pipeline_mode<synchronous>, transform_indices = @transform_2, window_bounds = array<i64: 1, 128>}, {pipeline_mode = #tpu.pipeline_mode<synchronous>, transform_indices = @transform_3, window_bounds = array<i64: 128, 128>}, {pipeline_mode = #tpu.pipeline_mode<synchronous>, transform_indices = @transform_4, window_bounds = array<i64: 1, 128>}, {pipeline_mode = #tpu.pipeline_mode<synchronous>, transform_indices = @transform_5, window_bounds = array<i64: 128, 128>}, {pipeline_mode = #tpu.pipeline_mode<synchronous>, transform_indices = @transform_6, window_bounds = array<i64: 1, 128>}, {pipeline_mode = #tpu.pipeline_mode<synchronous>, transform_indices = @transform_7, window_bounds = array<i64: 128, 128>}, {pipeline_mode = #tpu.pipeline_mode<synchronous>, transform_indices = @transform_8, window_bounds = array<i64: 1, 128>}, {transform_indices = @transform_9, window_bounds = array<i64: 8, 128>}, {transform_indices = @transform_10, window_bounds = array<i64: 8, 128>}]} {
    %c0 = arith.constant 0 : index
    %c0_0 = arith.constant 0 : index
    %0 = vector.load %arg1[%c0, %c0_0] : memref<8x128xf32, #tpu.memory_space<vmem>>, vector<8x128xf32>
    %c0_1 = arith.constant 0 : index
    %c0_2 = arith.constant 0 : index
    %1 = vector.load %arg2[%c0_1, %c0_2] : memref<128x128xf32, #tpu.memory_space<vmem>>, vector<128x128xf32>
    %cst = arith.constant dense<0.000000e+00> : vector<8x128xf32>
    %2 = tpu.matmul %0, %1, %cst {dimension_numbers = #tpu.dot_dimension_numbers<[1], [0], [0], [1], [0, 0, 1, 1], [], []>} : vector<8x128xf32>, vector<128x128xf32>, vector<8x128xf32> -> vector<8x128xf32>
    %c0_3 = arith.constant 0 : index
    %c0_4 = arith.constant 0 : index
    %3 = vector.load %arg3[%c0_3, %c0_4] : memref<1x128xf32, #tpu.memory_space<vmem>>, vector<1x128xf32>
    %4 = vector.broadcast %3 : vector<1x128xf32> to vector<8x128xf32>
    %5 = arith.addf %2, %4 : vector<8x128xf32>
    %cst_5 = arith.constant 3.200000e+01 : f32
    %6 = vector.broadcast %cst_5 : f32 to vector<8x128xf32>
    %7 = arith.mulf %6, %5 : vector<8x128xf32>
    %cst_6 = arith.constant 2.000000e+01 : f32
    %8 = vector.broadcast %cst_6 : f32 to vector<8x128xf32>
    %9 = arith.minimumf %7, %8 : vector<8x128xf32>
    %10 = math.exp %9 : vector<8x128xf32>
    %11 = math.log1p %10 : vector<8x128xf32>
    %cst_7 = arith.constant 3.125000e-02 : f32
    %12 = vector.broadcast %cst_7 : f32 to vector<8x128xf32>
    %13 = arith.mulf %11, %12 : vector<8x128xf32>
    %cst_8 = arith.constant 2.000000e+01 : f32
    %14 = vector.broadcast %cst_8 : f32 to vector<8x128xf32>
    %15 = arith.cmpf ogt, %7, %14 : vector<8x128xf32>
    %16 = arith.select %15, %5, %13 : vector<8x128xi1>, vector<8x128xf32>
    %c0_9 = arith.constant 0 : index
    %c0_10 = arith.constant 0 : index
    %17 = vector.load %arg4[%c0_9, %c0_10] : memref<128x128xf32, #tpu.memory_space<vmem>>, vector<128x128xf32>
    %cst_11 = arith.constant dense<0.000000e+00> : vector<8x128xf32>
    %18 = tpu.matmul %16, %17, %cst_11 {dimension_numbers = #tpu.dot_dimension_numbers<[1], [0], [0], [1], [0, 0, 1, 1], [], []>} : vector<8x128xf32>, vector<128x128xf32>, vector<8x128xf32> -> vector<8x128xf32>
    %c0_12 = arith.constant 0 : index
    %c0_13 = arith.constant 0 : index
    %19 = vector.load %arg5[%c0_12, %c0_13] : memref<1x128xf32, #tpu.memory_space<vmem>>, vector<1x128xf32>
    %20 = vector.broadcast %19 : vector<1x128xf32> to vector<8x128xf32>
    %21 = arith.addf %18, %20 : vector<8x128xf32>
    %cst_14 = arith.constant 8.000000e+00 : f32
    %22 = vector.broadcast %cst_14 : f32 to vector<8x128xf32>
    %23 = arith.mulf %22, %21 : vector<8x128xf32>
    %cst_15 = arith.constant 2.000000e+01 : f32
    %24 = vector.broadcast %cst_15 : f32 to vector<8x128xf32>
    %25 = arith.minimumf %23, %24 : vector<8x128xf32>
    %26 = math.exp %25 : vector<8x128xf32>
    %27 = math.log1p %26 : vector<8x128xf32>
    %cst_16 = arith.constant 1.250000e-01 : f32
    %28 = vector.broadcast %cst_16 : f32 to vector<8x128xf32>
    %29 = arith.mulf %27, %28 : vector<8x128xf32>
    %cst_17 = arith.constant 2.000000e+01 : f32
    %30 = vector.broadcast %cst_17 : f32 to vector<8x128xf32>
    %31 = arith.cmpf ogt, %23, %30 : vector<8x128xf32>
    %32 = arith.select %31, %21, %29 : vector<8x128xi1>, vector<8x128xf32>
    %c0_18 = arith.constant 0 : index
    %c0_19 = arith.constant 0 : index
    %33 = vector.load %arg10[%c0_18, %c0_19] : memref<8x128xf32, #tpu.memory_space<vmem>>, vector<8x128xf32>
    tpu.vector_store %arg10[%c0_18, %c0_19], %32 {strides = array<i32>} : memref<8x128xf32, #tpu.memory_space<vmem>>, vector<8x128xf32>,
    %c0_20 = arith.constant 0 : index
    %c0_21 = arith.constant 0 : index
    %34 = vector.load %arg6[%c0_20, %c0_21] : memref<128x128xf32, #tpu.memory_space<vmem>>, vector<128x128xf32>
    %cst_22 = arith.constant dense<0.000000e+00> : vector<8x128xf32>
    %35 = tpu.matmul %32, %34, %cst_22 {dimension_numbers = #tpu.dot_dimension_numbers<[1], [0], [0], [1], [0, 0, 1, 1], [], []>} : vector<8x128xf32>, vector<128x128xf32>, vector<8x128xf32> -> vector<8x128xf32>
    %c0_23 = arith.constant 0 : index
    %c0_24 = arith.constant 0 : index
    %36 = vector.load %arg7[%c0_23, %c0_24] : memref<1x128xf32, #tpu.memory_space<vmem>>, vector<1x128xf32>
    %37 = vector.broadcast %36 : vector<1x128xf32> to vector<8x128xf32>
    %38 = arith.addf %35, %37 : vector<8x128xf32>
    %cst_25 = arith.constant 3.200000e+01 : f32
    %39 = vector.broadcast %cst_25 : f32 to vector<8x128xf32>
    %40 = arith.mulf %39, %38 : vector<8x128xf32>
    %cst_26 = arith.constant 2.000000e+01 : f32
    %41 = vector.broadcast %cst_26 : f32 to vector<8x128xf32>
    %42 = arith.minimumf %40, %41 : vector<8x128xf32>
    %43 = math.exp %42 : vector<8x128xf32>
    %44 = math.log1p %43 : vector<8x128xf32>
    %cst_27 = arith.constant 3.125000e-02 : f32
    %45 = vector.broadcast %cst_27 : f32 to vector<8x128xf32>
    %46 = arith.mulf %44, %45 : vector<8x128xf32>
    %cst_28 = arith.constant 2.000000e+01 : f32
    %47 = vector.broadcast %cst_28 : f32 to vector<8x128xf32>
    %48 = arith.cmpf ogt, %40, %47 : vector<8x128xf32>
    %49 = arith.select %48, %38, %46 : vector<8x128xi1>, vector<8x128xf32>
    %c0_29 = arith.constant 0 : index
    %c0_30 = arith.constant 0 : index
    %50 = vector.load %arg8[%c0_29, %c0_30] : memref<128x128xf32, #tpu.memory_space<vmem>>, vector<128x128xf32>
    %cst_31 = arith.constant dense<0.000000e+00> : vector<8x128xf32>
    %51 = tpu.matmul %49, %50, %cst_31 {dimension_numbers = #tpu.dot_dimension_numbers<[1], [0], [0], [1], [0, 0, 1, 1], [], []>} : vector<8x128xf32>, vector<128x128xf32>, vector<8x128xf32> -> vector<8x128xf32>
    %c0_32 = arith.constant 0 : index
    %c0_33 = arith.constant 0 : index
    %52 = vector.load %arg9[%c0_32, %c0_33] : memref<1x128xf32, #tpu.memory_space<vmem>>, vector<1x128xf32>
    %53 = vector.broadcast %52 : vector<1x128xf32> to vector<8x128xf32>
    %54 = arith.addf %51, %53 : vector<8x128xf32>
    %cst_34 = arith.constant 1.600000e+01 : f32
    %55 = vector.broadcast %cst_34 : f32 to vector<8x128xf32>
    %56 = arith.mulf %55, %54 : vector<8x128xf32>
    %cst_35 = arith.constant 2.000000e+01 : f32
    %57 = vector.broadcast %cst_35 : f32 to vector<8x128xf32>
    %58 = arith.minimumf %56, %57 : vector<8x128xf32>
    %59 = math.exp %58 : vector<8x128xf32>
    %60 = math.log1p %59 : vector<8x128xf32>
    %cst_36 = arith.constant 6.250000e-02 : f32
    %61 = vector.broadcast %cst_36 : f32 to vector<8x128xf32>
    %62 = arith.mulf %60, %61 : vector<8x128xf32>
    %cst_37 = arith.constant 2.000000e+01 : f32
    %63 = vector.broadcast %cst_37 : f32 to vector<8x128xf32>
    %64 = arith.cmpf ogt, %56, %63 : vector<8x128xf32>
    %65 = arith.select %64, %54, %62 : vector<8x128xi1>, vector<8x128xf32>
    %c0_38 = arith.constant 0 : index
    %c0_39 = arith.constant 0 : index
    %66 = vector.load %arg11[%c0_38, %c0_39] : memref<8x128xf32, #tpu.memory_space<vmem>>, vector<8x128xf32>
    tpu.vector_store %arg11[%c0_38, %c0_39], %65 {strides = array<i32>} : memref<8x128xf32, #tpu.memory_space<vmem>>, vector<8x128xf32>,
    return
  }
  func.func @transform_0(%arg0: i32) -> (i32, i32) {
    %c0_i32 = arith.constant 0 : i32
    %c0_i32_0 = arith.constant 0 : i32
    return %arg0, %c0_i32 : i32, i32
  }
  func.func @transform_1(%arg0: i32) -> (i32, i32) {
    %c0_i32 = arith.constant 0 : i32
    %c0_i32_0 = arith.constant 0 : i32
    %c0_i32_1 = arith.constant 0 : i32
    return %c0_i32, %c0_i32_0 : i32, i32
  }
  func.func @transform_2(%arg0: i32) -> (i32, i32) {
    %c0_i32 = arith.constant 0 : i32
    %c0_i32_0 = arith.constant 0 : i32
    %c0_i32_1 = arith.constant 0 : i32
    return %c0_i32, %c0_i32_0 : i32, i32
  }
  func.func @transform_3(%arg0: i32) -> (i32, i32) {
    %c0_i32 = arith.constant 0 : i32
    %c0_i32_0 = arith.constant 0 : i32
    %c0_i32_1 = arith.constant 0 : i32
    return %c0_i32, %c0_i32_0 : i32, i32
  }
  func.func @transform_4(%arg0: i32) -> (i32, i32) {
    %c0_i32 = arith.constant 0 : i32
    %c0_i32_0 = arith.constant 0 : i32
    %c0_i32_1 = arith.constant 0 : i32
    return %c0_i32, %c0_i32_0 : i32, i32
  }
  func.func @transform_5(%arg0: i32) -> (i32, i32) {
    %c0_i32 = arith.constant 0 : i32
    %c0_i32_0 = arith.constant 0 : i32
    %c0_i32_1 = arith.constant 0 : i32
    return %c0_i32, %c0_i32_0 : i32, i32
  }
  func.func @transform_6(%arg0: i32) -> (i32, i32) {
    %c0_i32 = arith.constant 0 : i32
    %c0_i32_0 = arith.constant 0 : i32
    %c0_i32_1 = arith.constant 0 : i32
    return %c0_i32, %c0_i32_0 : i32, i32
  }
  func.func @transform_7(%arg0: i32) -> (i32, i32) {
    %c0_i32 = arith.constant 0 : i32
    %c0_i32_0 = arith.constant 0 : i32
    %c0_i32_1 = arith.constant 0 : i32
    return %c0_i32, %c0_i32_0 : i32, i32
  }
  func.func @transform_8(%arg0: i32) -> (i32, i32) {
    %c0_i32 = arith.constant 0 : i32
    %c0_i32_0 = arith.constant 0 : i32
    %c0_i32_1 = arith.constant 0 : i32
    return %c0_i32, %c0_i32_0 : i32, i32
  }
  func.func @transform_9(%arg0: i32) -> (i32, i32) {
    %c0_i32 = arith.constant 0 : i32
    %c0_i32_0 = arith.constant 0 : i32
    return %arg0, %c0_i32 : i32, i32
  }
  func.func @transform_10(%arg0: i32) -> (i32, i32) {
    %c0_i32 = arith.constant 0 : i32
    %c0_i32_0 = arith.constant 0 : i32
    return %arg0, %c0_i32 : i32, i32
  }
}

</mosaic_0001>

<bundles_post_ra>
// kernel: autoencoder_two_layers.1
= control target key start
LH: loop header
LB: loop body
LE: loop exit
PB: predicated region body
PF: predicated region fallthrough
CT: control target
= control target key end

     0   :  { %16 = vsyncpa [#allocation3], 0  ;;  %v880_v3 = vmov 0.0|0.0   ;;  %vm881_vm0 = vmmov 0   ;;  %v882_v6 = vmov 0.0   ;;  %s1211_s0 = inlined_call_operand.vmem [shape: f32[8,128], index: 0, kind: input, shape index: {}]   ;;  %s1212_s1 = inlined_call_operand.vmem [shape: f32[128,128], index: 1, kind: input, shape index: {}]   ;;  %s1213_s2 = inlined_call_operand.vmem [shape: f32[1,128], index: 2, kind: input, shape index: {}]   ;;  %s1214_s3 = inlined_call_operand.vmem [shape: f32[128,128], index: 3, kind: input, shape index: {}]   ;;  %s1215_s4 = inlined_call_operand.vmem [shape: f32[1,128], index: 4, kind: input, shape index: {}]   ;;  %s1216_s5 = inlined_call_operand.vmem [shape: f32[128,128], index: 5, kind: input, shape index: {}]   ;;  %s1217_s6 = inlined_call_operand.vmem [shape: f32[1,128], index: 6, kind: input, shape index: {}]   ;;  %s1218_s7 = inlined_call_operand.vmem [shape: f32[128,128], index: 7, kind: input, shape index: {}]   ;;  %s1219_s8 = inlined_call_operand.vmem [shape: f32[1,128], index: 8, kind: input, shape index: {}]   ;;  %s1220_s9 = inlined_call_operand.hbm [shape: f32[8,128], index: 9, kind: output, shape index: {0}]   ;;  %s1221_s10 = inlined_call_operand.hbm [shape: f32[8,128], index: 10, kind: output, shape index: {1}]  }
   0x1   :  { %v37_v0 = vld [vmem:[%s1212_s1] sm:$0xff]  ;;  %v38_v1 = vld [vmem:[%s1212_s1 + $0x8] sm:$0xff]  ;;  %v39_v2 = vld [vmem:[%s1212_s1 + $0x10] sm:$0xff]  ;;  %715 = vmatprep.subr.bf16.mxu0 %v880_v3  ;;  %607 = vmatprep.mubr.msk.f32.mxu0 %vm881_vm0, %v882_v6 }
   0x2   :  { %v716_v4 = vpack.c.bf16 %v38_v1, %v37_v0  ;;  %v40_v5 = vld [vmem:[%s1212_s1 + $0x18] sm:$0xff]  ;;  %739 = vmatprep.subr.bf16.mxu1 %v880_v3  ;;  %642 = vmatprep.mubr.msk.f32.mxu1 %vm881_vm0, %v882_v6  ;;  %v41_v8 = vld [vmem:[%s1212_s1 + $0x20] sm:$0xff]  ;;  %v42_v9 = vld [vmem:[%s1212_s1 + $0x28] sm:$0xff] }
   0x3   :  { %v719_v7 = vpack.c.bf16 %v40_v5, %v39_v2 }
   0x4   :  { %717 = vmatpush3.bf16.msra.mxu0 %v716_v4 }
   0x5   :  { %718 = vmatprep.subr.bf16.mxu0 %v880_v3 }
   0x6   :  { %17 = vsyncpa [#allocation5], 0  ;;  %v722_v10 = vpack.c.bf16 %v42_v9, %v41_v8  ;;  %v43_v11 = vld [vmem:[%s1212_s1 + $0x30] sm:$0xff]  ;;  %v44_v12 = vld [vmem:[%s1212_s1 + $0x38] sm:$0xff] }
   0x7   :  { %v725_v13 = vpack.c.bf16 %v44_v12, %v43_v11  ;;  %v45_v14 = vld [vmem:[%s1212_s1 + $0x40] sm:$0xff]  ;;  %v46_v15 = vld [vmem:[%s1212_s1 + $0x48] sm:$0xff]  ;;  %v47_v17 = vld [vmem:[%s1212_s1 + $0x50] sm:$0xff] }
   0x8   :  { %720 = vmatpush3.bf16.msra.mxu0 %v719_v7  ;;  %v728_v16 = vpack.c.bf16 %v46_v15, %v45_v14  ;;  %v48_v18 = vld [vmem:[%s1212_s1 + $0x58] sm:$0xff]  ;;  %v49_v20 = vld [vmem:[%s1212_s1 + $0x60] sm:$0xff]  ;;  %v50_v21 = vld [vmem:[%s1212_s1 + $0x68] sm:$0xff] }
   0x9   :  { %721 = vmatprep.subr.bf16.mxu0 %v880_v3  ;;  %v731_v19 = vpack.c.bf16 %v48_v18, %v47_v17  ;;  %v734_v22 = vpack.c.bf16 %v50_v21, %v49_v20  ;;  %v51_v23 = vld [vmem:[%s1212_s1 + $0x70] sm:$0xff]  ;;  %v52_v24 = vld [vmem:[%s1212_s1 + $0x78] sm:$0xff]  ;;  %v36_v26 = vld [vmem:[%s1211_s0] sm:$0xff] }
   0xa   :  { %v737_v25 = vpack.c.bf16 %v52_v24, %v51_v23  ;;  %v146_v27 = vld [vmem:[%s1214_s3] sm:$0xff]  ;;  %v147_v28 = vld [vmem:[%s1214_s3 + $0x8] sm:$0xff]  ;;  %v148_v30 = vld [vmem:[%s1214_s3 + $0x10] sm:$0xff] }
   0xb   :  { %v740_v29 = vpack.c.bf16 %v147_v28, %v146_v27  ;;  %v149_v31 = vld [vmem:[%s1214_s3 + $0x18] sm:$0xff]  ;;  %v150_v32 = vld [vmem:[%s1214_s3 + $0x20] sm:$0xff]  ;;  %v151_v34 = vld [vmem:[%s1214_s3 + $0x28] sm:$0xff] }
   0xc   :  { %723 = vmatpush3.bf16.msra.mxu0 %v722_v10  ;;  %v743_v33 = vpack.c.bf16 %v149_v31, %v148_v30  ;;  %v746_v35 = vpack.c.bf16 %v151_v34, %v150_v32  ;;  %v152_v36 = vld [vmem:[%s1214_s3 + $0x30] sm:$0xff]  ;;  %v153_v37 = vld [vmem:[%s1214_s3 + $0x38] sm:$0xff]  ;;  %v154_v39 = vld [vmem:[%s1214_s3 + $0x40] sm:$0xff] }
   0xd   :  { %724 = vmatprep.subr.bf16.mxu0 %v880_v3  ;;  %741 = vmatpush3.bf16.msra.mxu1 %v740_v29  ;;  %v749_v38 = vpack.c.bf16 %v153_v37, %v152_v36  ;;  %v155_v40 = vld [vmem:[%s1214_s3 + $0x48] sm:$0xff]  ;;  %v156_v42 = vld [vmem:[%s1214_s3 + $0x50] sm:$0xff]  ;;  %v157_v43 = vld [vmem:[%s1214_s3 + $0x58] sm:$0xff] }
   0xe   :  { %742 = vmatprep.subr.bf16.mxu1 %v880_v3  ;;  %v752_v41 = vpack.c.bf16 %v155_v40, %v154_v39  ;;  %v755_v44 = vpack.c.bf16 %v157_v43, %v156_v42  ;;  %v158_v45 = vld [vmem:[%s1214_s3 + $0x60] sm:$0xff]  ;;  %v159_v46 = vld [vmem:[%s1214_s3 + $0x68] sm:$0xff]  ;;  %v160_v48 = vld [vmem:[%s1214_s3 + $0x70] sm:$0xff] }
   0xf   :  { %v758_v47 = vpack.c.bf16 %v159_v46, %v158_v45  ;;  %v161_v49 = vld [vmem:[%s1214_s3 + $0x78] sm:$0xff]  ;;  %v503_v51 = vld [vmem:[%s1213_s2] ss:$0 sm:$0xff]  ;;  %v257_v8 = vld [vmem:[%s1216_s5 + $0x8] sm:$0xff] }
  0x10   :  { %726 = vmatpush3.bf16.msra.mxu0 %v725_v13  ;;  %v761_v50 = vpack.c.bf16 %v161_v49, %v160_v48  ;;  %v256_v7 = vld [vmem:[%s1216_s5] sm:$0xff]  ;;  %v258_v10 = vld [vmem:[%s1216_s5 + $0x10] sm:$0xff]  ;;  %v261_v13 = vld [vmem:[%s1216_s5 + $0x28] sm:$0xff] }
  0x11   :  { %727 = vmatprep.subr.bf16.mxu0 %v880_v3  ;;  %744 = vmatpush3.bf16.msra.mxu1 %v743_v33  ;;  %v764_v9 = vpack.c.bf16 %v257_v8, %v256_v7  ;;  %v260_v11 = vld [vmem:[%s1216_s5 + $0x20] sm:$0xff]  ;;  %v262_v15 = vld [vmem:[%s1216_s5 + $0x30] sm:$0xff]  ;;  %v271_v28 = vld [vmem:[%s1216_s5 + $0x78] sm:$0xff] }
  0x12   :  { %745 = vmatprep.subr.bf16.mxu1 %v880_v3  ;;  %v770_v14 = vpack.c.bf16 %v261_v13, %v260_v11  ;;  %v264_v18 = vld [vmem:[%s1216_s5 + $0x40] sm:$0xff]  ;;  %v266_v21 = vld [vmem:[%s1216_s5 + $0x50] sm:$0xff]  ;;  %v366_v49 = vld [vmem:[%s1218_s7 + $0x8] sm:$0xff] }
  0x13   :  { %v268_v24 = vld [vmem:[%s1216_s5 + $0x60] sm:$0xff]  ;;  %v270_v27 = vld [vmem:[%s1216_s5 + $0x70] sm:$0xff]  ;;  %v380_v8 = vld [vmem:[%s1218_s7 + $0x78] sm:$0xff] }
  0x14   :  { %729 = vmatpush3.bf16.msra.mxu0 %v728_v16  ;;  %v263_v16 = vld [vmem:[%s1216_s5 + $0x38] sm:$0xff]  ;;  %v785_v29 = vpack.c.bf16 %v271_v28, %v270_v27  ;;  %v504_v30 = vld [vmem:[%s1215_s4] ss:$0 sm:$0xff]  ;;  %v379_v7 = vld [vmem:[%s1218_s7 + $0x70] sm:$0xff] }
  0x15   :  { %730 = vmatprep.subr.bf16.mxu0 %v880_v3  ;;  %747 = vmatpush3.bf16.msra.mxu1 %v746_v35  ;;  %v773_v17 = vpack.c.bf16 %v263_v16, %v262_v15  ;;  %v365_v48 = vld [vmem:[%s1218_s7] sm:$0xff] }
  0x16   :  { %748 = vmatprep.subr.bf16.mxu1 %v880_v3 }
  0x18   :  { %732 = vmatpush3.bf16.msra.mxu0 %v731_v19  ;;  %v265_v19 = vld [vmem:[%s1216_s5 + $0x48] sm:$0xff] }
  0x19   :  { %733 = vmatprep.subr.bf16.mxu0 %v880_v3  ;;  %750 = vmatpush3.bf16.msra.mxu1 %v749_v38  ;;  %v776_v20 = vpack.c.bf16 %v265_v19, %v264_v18 }
  0x1a   :  { %751 = vmatprep.subr.bf16.mxu1 %v880_v3 }
  0x1c   :  { %735 = vmatpush3.bf16.msra.mxu0 %v734_v22  ;;  %v267_v22 = vld [vmem:[%s1216_s5 + $0x58] sm:$0xff] }
  0x1d   :  { %736 = vmatprep.subr.bf16.mxu0 %v880_v3  ;;  %753 = vmatpush3.bf16.msra.mxu1 %v752_v41  ;;  %v779_v23 = vpack.c.bf16 %v267_v22, %v266_v21 }
  0x1e   :  { %754 = vmatprep.subr.bf16.mxu1 %v880_v3 }
  0x20   :  { %738 = vmatpush3.bf16.msra.mxu0 %v737_v25  ;;  %v269_v25 = vld [vmem:[%s1216_s5 + $0x68] sm:$0xff] }
  0x21   :  { %763 = vmatprep.subr.bf16.mxu0 %v880_v3  ;;  %756 = vmatpush3.bf16.msra.mxu1 %v755_v44 }
  0x22   :  { %757 = vmatprep.subr.bf16.mxu1 %v880_v3 }
  0x23   :  { %608 = vmatmul.mubr.f32.vlgmr.msra.gmra.mrb[0].mxu0 %v36_v26  ;;  %v782_v26 = vpack.c.bf16 %v269_v25, %v268_v24 }
  0x24   :  { %677 = vmatprep.mubr.msk.f32.mxu0 %vm881_vm0, %v882_v6  ;;  %765 = vmatpush3.bf16.msra.mxu0 %v764_v9  ;;  %v809_v9 = vpack.c.bf16 %v380_v8, %v379_v7 }
  0x25   :  { %759 = vmatpush3.bf16.msra.mxu1 %v758_v47  ;;  %766 = vmatprep.subr.bf16.mxu0 %v880_v3 }
  0x26   :  { %760 = vmatprep.subr.bf16.mxu1 %v880_v3 }
  0x29   :  { %762 = vmatpush3.bf16.msra.mxu1 %v761_v50  ;;  %v788_v50 = vpack.c.bf16 %v366_v49, %v365_v48 }
  0x2a   :  { %787 = vmatprep.subr.bf16.mxu1 %v880_v3 }
  0xf6   :  { %v126_v52 = vpop.f32.mrb[0].mxu0 }
  0xf7   :  { %v127_v53 = vadd.f32 %v503_v51, %v126_v52  ;;  %v609_v54 = vpop.f32.mrb[1].mxu0  ;;  %v367_v51 = vld [vmem:[%s1218_s7 + $0x10] sm:$0xff]  ;;  %v368_v52 = vld [vmem:[%s1218_s7 + $0x18] sm:$0xff] }
  0xf8   :  { %v791_v54 = vpack.c.bf16 %v368_v52, %v367_v51 }
  0xf9   :  { %v130_v55 = vmul.f32 32.0, %v127_v53 }
  0xfb   :  { %v131_v56 = vmin.f32 %v130_v55, 20.0  ;;  %vm144_vm2 = vcmp.gt.f32.partialorder %v130_v55, 20.0  ;;  %v370_v55 = vld [vmem:[%s1218_s7 + $0x28] sm:$0xff] }
  0xfd   :  { %v132_v57 = vmul.f32 1.442695, %v131_v56 }
  0xff   :  { %816 = vpow2.f32 %v132_v57  ;;  %v371_v57 = vld [vmem:[%s1218_s7 + $0x30] sm:$0xff] }
 0x109   :  { %v817_v58 = vpop.eup %816 }
 0x10a   :  { %v134_v59 = vadd.f32 1.0, %v817_v58  ;;  %v137_v60 = vmul.f32 -0.5, %v817_v58  ;;  %v140_v62 = vand.u32 2147483647, %v817_v58 }
 0x10c   :  { %818 = vlog2.f32 %v134_v59  ;;  %v138_v61 = vadd.f32 1.0, %v137_v60  ;;  %vm141_vm1 = vcmp.lt.f32.partialorder %v140_v62, 0.0004427343  ;;  %v373_v60 = vld [vmem:[%s1218_s7 + $0x40] sm:$0xff] }
 0x10e   :  { %v139_v1 = vmul.f32 %v817_v58, %v138_v61  ;;  %v372_v58 = vld [vmem:[%s1218_s7 + $0x38] sm:$0xff]  ;;  %v374_v61 = vld [vmem:[%s1218_s7 + $0x48] sm:$0xff] }
 0x10f   :  { %v797_v59 = vpack.c.bf16 %v372_v58, %v371_v57  ;;  %v800_v62 = vpack.c.bf16 %v374_v61, %v373_v60 }
 0x116   :  { %v819_v63 = vpop.eup %818 }
 0x117   :  { %v136_v0 = vmul.f32 0.6931472, %v819_v63  ;;  %v375_v63 = vld [vmem:[%s1218_s7 + $0x50] sm:$0xff] }
 0x119   :  { %v142_v2 = vsel %vm141_vm1, %v139_v1, %v136_v0  ;;  %v376_v0 = vld [vmem:[%s1218_s7 + $0x58] sm:$0xff] }
 0x11a   :  { %v143_v4 = vmul.f32 0.03125, %v142_v2  ;;  %v803_v1 = vpack.c.bf16 %v376_v0, %v375_v63  ;;  %v377_v2 = vld [vmem:[%s1218_s7 + $0x60] sm:$0xff] }
 0x11c   :  { %v145_v5 = vsel %vm144_vm2, %v127_v53, %v143_v4  ;;  %v369_v53 = vld [vmem:[%s1218_s7 + $0x20] sm:$0xff]  ;;  %v378_v4 = vld [vmem:[%s1218_s7 + $0x68] sm:$0xff] }
 0x11d   :  { %643 = vmatmul.mubr.f32.vlgmr.msra.gmra.mrb[0].mxu1 %v145_v5  ;;  %v794_v56 = vpack.c.bf16 %v370_v55, %v369_v53  ;;  %v806_v5 = vpack.c.bf16 %v378_v4, %v377_v2 }
 0x11e   :  { %712 = vmatprep.mubr.msk.f32.mxu1 %vm881_vm0, %v882_v6  ;;  %v259_v6 = vld [vmem:[%s1216_s5 + $0x18] sm:$0xff]  ;;  %789 = vmatpush3.bf16.msra.mxu1 %v788_v50 }
 0x11f   :  { %v767_v12 = vpack.c.bf16 %v259_v6, %v258_v10  ;;  %790 = vmatprep.subr.bf16.mxu1 %v880_v3  ;;  %v505_v10 = vld [vmem:[%s1217_s6] ss:$0 sm:$0xff]  ;;  %s883_s6 = smov [#allocation2]  }
 0x120   :  { %s481_s7 = sshll.u32 %s883_s6, 4  ;;  %s482_s7 = int_to_ptr.vmem [resolvable:$true] %s481_s7 }
 0x121   :  { %768 = vmatpush3.bf16.msra.mxu0 %v767_v12  ;;  %s832_s30 = scalar_lea.vmem %s482_s7, 128  ;;  %p837_p1 = scmp.lt.s32.totalorder %s482_s7, %s482_s7 }
 0x122   :  { %769 = vmatprep.subr.bf16.mxu0 %v880_v3  ;;  %792 = vmatpush3.bf16.msra.mxu1 %v791_v54  ;;  %p833_p0 = scmp.ne.s32.totalorder %s482_s7, %s832_s30  ;;  %p838_p2 = scmp.lt.s32.totalorder %s832_s30, %s832_s30 }
 0x123   :  { %793 = vmatprep.subr.bf16.mxu1 %v880_v3 }
 0x124   :  { %p839_p3 = por %p838_p2, %p837_p1 }
 0x125   :  { %771 = vmatpush3.bf16.msra.mxu0 %v770_v14 }
 0x126   :  { %772 = vmatprep.subr.bf16.mxu0 %v880_v3  ;;  %795 = vmatpush3.bf16.msra.mxu1 %v794_v56  ;;  %p840_p4 = pnand %p839_p3, %p833_p0 }
 0x127   :  { %796 = vmatprep.subr.bf16.mxu1 %v880_v3 }
 0x129   :  { %774 = vmatpush3.bf16.msra.mxu0 %v773_v17 }
 0x12a   :  { %775 = vmatprep.subr.bf16.mxu0 %v880_v3  ;;  %798 = vmatpush3.bf16.msra.mxu1 %v797_v59 }
 0x12b   :  { %799 = vmatprep.subr.bf16.mxu1 %v880_v3 }
 0x12d   :  { %777 = vmatpush3.bf16.msra.mxu0 %v776_v20 }
 0x12e   :  { %778 = vmatprep.subr.bf16.mxu0 %v880_v3  ;;  %801 = vmatpush3.bf16.msra.mxu1 %v800_v62 }
 0x12f   :  { %802 = vmatprep.subr.bf16.mxu1 %v880_v3 }
 0x131   :  { %780 = vmatpush3.bf16.msra.mxu0 %v779_v23 }
 0x132   :  { %781 = vmatprep.subr.bf16.mxu0 %v880_v3  ;;  %804 = vmatpush3.bf16.msra.mxu1 %v803_v1 }
 0x133   :  { %805 = vmatprep.subr.bf16.mxu1 %v880_v3 }
 0x135   :  { %783 = vmatpush3.bf16.msra.mxu0 %v782_v26 }
 0x136   :  { %784 = vmatprep.subr.bf16.mxu0 %v880_v3  ;;  %807 = vmatpush3.bf16.msra.mxu1 %v806_v5 }
 0x137   :  { %808 = vmatprep.subr.bf16.mxu1 %v880_v3 }
 0x139   :  { %786 = vmatpush3.bf16.msra.mxu0 %v785_v29 }
 0x13a   :  { %810 = vmatpush3.bf16.msra.mxu1 %v809_v9 }
 0x1f0   :  { %v235_v31 = vpop.f32.mrb[0].mxu1 }
 0x1f1   :  { %v236_v32 = vadd.f32 %v504_v30, %v235_v31  ;;  %v644_v33 = vpop.f32.mrb[1].mxu1 }
 0x1f3   :  { %v239_v34 = vmul.f32 8.0, %v236_v32 }
 0x1f5   :  { %v240_v35 = vmin.f32 %v239_v34, 20.0  ;;  %vm253_vm4 = vcmp.gt.f32.partialorder %v239_v34, 20.0 }
 0x1f7   :  { %v241_v36 = vmul.f32 1.442695, %v240_v35 }
 0x1f9   :  { %820 = vpow2.f32 %v241_v36 }
 0x203   :  { %v821_v37 = vpop.eup %820 }
 0x204   :  { %v243_v38 = vadd.f32 1.0, %v821_v37  ;;  %v246_v39 = vmul.f32 -0.5, %v821_v37  ;;  %v249_v41 = vand.u32 2147483647, %v821_v37 }
 0x206   :  { %822 = vlog2.f32 %v243_v38  ;;  %v247_v40 = vadd.f32 1.0, %v246_v39  ;;  %vm250_vm3 = vcmp.lt.f32.partialorder %v249_v41, 0.0004427343 }
 0x208   :  { %v248_v44 = vmul.f32 %v821_v37, %v247_v40 }
 0x210   :  { %v823_v42 = vpop.eup %822 }
 0x211   :  { %v245_v43 = vmul.f32 0.6931472, %v823_v42 }
 0x213   :  { %v251_v45 = vsel %vm250_vm3, %v248_v44, %v245_v43 }
 0x214   :  { %v252_v46 = vmul.f32 0.125, %v251_v45 }
 0x216   :  { %v254_v47 = vsel %vm253_vm4, %v236_v32, %v252_v46 }
 0x217   :  { %678 = vmatmul.mubr.f32.vlgmr.msra.gmra.mrb[2].mxu0 %v254_v47  ;;  %255 = vst [vmem:[#allocation2] sm:$0xff] %v254_v47 }
 0x2ea   :  { %v345_v6 = vpop.f32.mrb[2].mxu0 }
 0x2eb   :  { %v346_v11 = vadd.f32 %v505_v10, %v345_v6  ;;  %v679_v12 = vpop.f32.mrb[3].mxu0 }
 0x2ed   :  { %v349_v13 = vmul.f32 32.0, %v346_v11 }
 0x2ef   :  { %v350_v14 = vmin.f32 %v349_v13, 20.0  ;;  %vm363_vm6 = vcmp.gt.f32.partialorder %v349_v13, 20.0 }
 0x2f1   :  { %v351_v15 = vmul.f32 1.442695, %v350_v14 }
 0x2f3   :  { %824 = vpow2.f32 %v351_v15 }
 0x2fd   :  { %v825_v16 = vpop.eup %824 }
 0x2fe   :  { %v353_v17 = vadd.f32 1.0, %v825_v16  ;;  %v356_v18 = vmul.f32 -0.5, %v825_v16  ;;  %v359_v20 = vand.u32 2147483647, %v825_v16 }
 0x300   :  { %826 = vlog2.f32 %v353_v17  ;;  %v357_v19 = vadd.f32 1.0, %v356_v18  ;;  %vm360_vm5 = vcmp.lt.f32.partialorder %v359_v20, 0.0004427343 }
 0x302   :  { %v358_v22 = vmul.f32 %v825_v16, %v357_v19 }
 0x30a   :  { %v827_v21 = vpop.eup %826 }
 0x30b   :  { %v355_v3 = vmul.f32 0.6931472, %v827_v21 }
 0x30d   :  { %v361_v23 = vsel %vm360_vm5, %v358_v22, %v355_v3 }
 0x30e   :  { %v362_v24 = vmul.f32 0.03125, %v361_v23 }
 0x310   :  { %v364_v25 = vsel %vm363_vm6, %v346_v11, %v362_v24 }
 0x311   :  { %713 = vmatmul.mubr.f32.vlgmr.msra.gmra.mrb[2].mxu1 %v364_v25 }
 0x312   :  { %843 = shalt.err (!%p840_p4)
}
 0x313   :  { %s844_s12 = scalar_lea.hbm %s1220_s9, 128 }
 0x314   :  { %p845_p5 = scmp.ne.s32.totalorder %s1220_s9, %s844_s12  ;;  %p848_p6 = scmp.lt.u32.totalorder %s844_s12, %s1220_s9 }
 0x316   :  { %p850_p7 = pnand %p848_p6, %p845_p5 }
 0x318   :  { %853 = shalt.err (!%p850_p7)
}
 0x319   :  { %484 = dma.vmem_to_hbm [thread:$0]  %s482_s7, 128, %s1220_s9, [#allocation3]   ;;  %v506_v26 = vld [vmem:[%s1219_s8] ss:$0 sm:$0xff] }
 0x31a   :  { %s884_s9 = smov [#allocation4]  }
 0x31b   :  { %s491_s19 = sshll.u32 %s884_s9, 4  ;;  %s492_s19 = int_to_ptr.vmem [resolvable:$true] %s491_s19 }
 0x31c   :  { %s854_s8 = scalar_lea.vmem %s492_s19, 128  ;;  %p859_p9 = scmp.lt.s32.totalorder %s492_s19, %s492_s19 }
 0x31d   :  { %p855_p8 = scmp.ne.s32.totalorder %s492_s19, %s854_s8  ;;  %p860_p10 = scmp.lt.s32.totalorder %s854_s8, %s854_s8 }
 0x31f   :  { %p861_p11 = por %p860_p10, %p859_p9 }
 0x321   :  { %p862_p12 = pnand %p861_p11, %p855_p8 }
 0x3e4   :  { %v454_v27 = vpop.f32.mrb[2].mxu1 }
 0x3e5   :  { %v455_v28 = vadd.f32 %v506_v26, %v454_v27  ;;  %v714_v29 = vpop.f32.mrb[3].mxu1 }
 0x3e7   :  { %v458_v30 = vmul.f32 16.0, %v455_v28 }
 0x3e9   :  { %v459_v31 = vmin.f32 %v458_v30, 20.0  ;;  %vm472_vm8 = vcmp.gt.f32.partialorder %v458_v30, 20.0 }
 0x3eb   :  { %v460_v32 = vmul.f32 1.442695, %v459_v31 }
 0x3ed   :  { %828 = vpow2.f32 %v460_v32 }
 0x3f7   :  { %v829_v33 = vpop.eup %828 }
 0x3f8   :  { %v462_v34 = vadd.f32 1.0, %v829_v33  ;;  %v465_v35 = vmul.f32 -0.5, %v829_v33  ;;  %v468_v37 = vand.u32 2147483647, %v829_v33 }
 0x3fa   :  { %830 = vlog2.f32 %v462_v34  ;;  %v466_v36 = vadd.f32 1.0, %v465_v35  ;;  %vm469_vm7 = vcmp.lt.f32.partialorder %v468_v37, 0.0004427343 }
 0x3fc   :  { %v467_v40 = vmul.f32 %v829_v33, %v466_v36 }
 0x404   :  { %v831_v38 = vpop.eup %830 }
 0x405   :  { %v464_v39 = vmul.f32 0.6931472, %v831_v38 }
 0x407   :  { %v470_v41 = vsel %vm469_vm7, %v467_v40, %v464_v39 }
 0x408   :  { %v471_v42 = vmul.f32 0.0625, %v470_v41 }
 0x40a   :  { %v473_v43 = vsel %vm472_vm8, %v455_v28, %v471_v42 }
 0x40b   :  { %474 = vst [vmem:[#allocation4] sm:$0xff] %v473_v43 }
 0x40c   :  { %865 = shalt.err (!%p862_p12)
}
 0x40d   :  { %s866_s22 = scalar_lea.hbm %s1221_s10, 128 }
 0x40e   :  { %p867_p13 = scmp.ne.s32.totalorder %s1221_s10, %s866_s22  ;;  %p870_p0 = scmp.lt.u32.totalorder %s866_s22, %s1221_s10 }
 0x410   :  { %p872_p1 = pnand %p870_p0, %p867_p13 }
 0x412   :  { %875 = shalt.err (!%p872_p1)
}
 0x413   :  { %494 = dma.vmem_to_hbm [thread:$0]  %s492_s19, 128, %s1221_s10, [#allocation5]  }
 0x414   :  { %876 = dma.done.wait [#allocation3], 128  }
 0x415   :  { %877 = vsyncadd [#allocation3], 4294967168 }
 0x416   :  { %878 = dma.done.wait [#allocation5], 128  }
 0x417   :  { %879 = vsyncadd [#allocation5], 4294967168 }
 0x418   :  { %501 = vsyncpa [#allocation3], 1 }
 0x419   :  { %502 = vsyncpa [#allocation5], 1 }

</bundles_post_ra>
